<compile_context>
chip_gen: v5e
topology: v5e:2x2
jax: 0.10.0
libtpu: 0.0.40
codegen_flags: <defaults>
</compile_context>

<pallas_src>
import jax
import jax.numpy as jnp
from jax.experimental import pallas as pl
from jax.experimental.pallas import tpu as pltpu


def scale_bias_kernel(w_ref, b_ref, x_ref, o_ref):
    # w_ref / b_ref: scalar-prefetched SMEM refs of shape (1,).
    # x_ref / o_ref: lane-dense VMEM tiles of shape (tm, N).
    w = w_ref[0]
    b = b_ref[0]
    o_ref[...] = (x_ref[...] * w + b).astype(o_ref.dtype)


def _lane_dense_2d_shape(x):
    """Pick a [rows, cols] factorization of x with cols a wide multiple of 128
    when possible (the op is elementwise + scalar broadcast, so any reshape is
    semantically safe).  Falls back to the natural [.., last_dim] layout."""
    total = x.size
    max_cols = 8192  # 8192 lanes * 4B = 32 KiB per row: wide but tile-friendly.
    best_cols = None
    c = 128
    while c <= min(total, max_cols):
        if total % c == 0:
            best_cols = c
        c += 128
    if best_cols is not None:
        return total // best_cols, best_cols
    # Fallback: natural trailing-dim layout.
    if x.ndim >= 2:
        return total // x.shape[-1], x.shape[-1]
    return 1, total


def network_forward(x, weights, bias, *, target_tile_bytes=2 * 1024 * 1024):
    """weights * x + bias, broadcast over all elements of x."""
    orig_shape = x.shape

    M, N = _lane_dense_2d_shape(x)
    x2 = x.reshape(M, N)

    itemsize = jnp.dtype(x2.dtype).itemsize
    sublane = {4: 8, 2: 16, 1: 32}.get(itemsize, 8)

    # Lane-dense block: full N along lanes; row-tile sized so the block is a
    # few MiB (mem-bound streaming — big tiles amortize per-step overhead).
    bytes_per_row = max(N * itemsize, 1)
    tm = max(sublane, (target_tile_bytes // bytes_per_row) // sublane * sublane)
    if tm >= M:
        tm = M  # single block along rows (full dims are always legal)
    # else: tm is a multiple of `sublane`, satisfying the (8,128) tiling rule.

    grid = (pl.cdiv(M, tm),)

    # Scalars for prefetch (32-bit, 1-D, SMEM-resident before the grid runs).
    w_flat = jnp.asarray(weights, jnp.float32).reshape(-1)
    b_flat = jnp.asarray(bias, jnp.float32).reshape(-1)

    cost = pl.CostEstimate(
        flops=2 * M * N,
        transcendentals=0,
        bytes_accessed=2 * M * N * itemsize + 8,
    )

    out2 = pl.pallas_call(
        scale_bias_kernel,
        out_shape=jax.ShapeDtypeStruct((M, N), x2.dtype),
        grid_spec=pltpu.PrefetchScalarGridSpec(
            num_scalar_prefetch=2,          # weights, bias -> SMEM once
            grid=grid,
            in_specs=[
                # input tile: full last dim (lane-dense), 1-D grid over rows.
                pl.BlockSpec((tm, N), lambda i, w, b: (i, 0)),
            ],
            out_specs=pl.BlockSpec((tm, N), lambda i, w, b: (i, 0)),
        ),
        compiler_params=pltpu.CompilerParams(
            dimension_semantics=("parallel",),   # shards rows across v7x's 2 TCs
            vmem_limit_bytes=32 << 20,           # > v5e's 16 MiB default, safe on v7x
        ),
        cost_estimate=cost,
    )(w_flat, b_flat, x2)

    return out2.reshape(orig_shape)


if __name__ == "__main__":
    key = jax.random.PRNGKey(0)
    kx, kw, kb = jax.random.split(key, 3)

    # Small shapes consistent with the module's broadcast semantics.
    x = jax.random.normal(kx, (16, 256), dtype=jnp.float32)
    weights = jax.random.normal(kw, (1, 1), dtype=jnp.float32)  # nn.Parameter(torch.randn(1, 1))
    bias = jax.random.normal(kb, (1,), dtype=jnp.float32)       # nn.Parameter(torch.randn(1))

    out = network_forward(x, weights, bias)
    out = jax.block_until_ready(out)

    # Reference check against plain JAX broadcast (same semantics as PyTorch).
    ref = weights * x + bias
    assert out.shape == ref.shape and out.dtype == ref.dtype
    assert jnp.allclose(out, ref, atol=1e-6, rtol=1e-6)

    print("KERNEL_OK")
</pallas_src>

<mosaic_0001>
module attributes {stable_mosaic.version = 11 : i64} {
  func.func @scale_bias_kernel(%arg0: i32, %arg1: memref<1xf32, #tpu.memory_space<smem>>, %arg2: memref<1xf32, #tpu.memory_space<smem>>, %arg3: memref<1x4096xf32, #tpu.memory_space<vmem>>, %arg4: memref<1x4096xf32, #tpu.memory_space<vmem>>) attributes {dimension_semantics = [#tpu.dimension_semantics<parallel>], iteration_bounds = array<i64: 1>, scalar_prefetch = 2 : i64, scratch_operands = 0 : i64, tpu.core_type = #tpu.core_type<tc>, window_params = [{transform_indices = @transform_0, window_bounds = array<i64: 1, 4096>}, {transform_indices = @transform_1, window_bounds = array<i64: 1, 4096>}]} {
    %c0 = arith.constant 0 : index
    %0 = memref.load %arg1[%c0] : memref<1xf32, #tpu.memory_space<smem>>
    %c0_0 = arith.constant 0 : index
    %1 = memref.load %arg2[%c0_0] : memref<1xf32, #tpu.memory_space<smem>>
    %c0_1 = arith.constant 0 : index
    %c0_2 = arith.constant 0 : index
    %2 = vector.load %arg3[%c0_1, %c0_2] : memref<1x4096xf32, #tpu.memory_space<vmem>>, vector<1x4096xf32>
    %3 = vector.broadcast %0 : f32 to vector<1x4096xf32>
    %4 = arith.mulf %2, %3 : vector<1x4096xf32>
    %5 = vector.broadcast %1 : f32 to vector<1x4096xf32>
    %6 = arith.addf %4, %5 : vector<1x4096xf32>
    %c0_3 = arith.constant 0 : index
    %c0_4 = arith.constant 0 : index
    %7 = vector.load %arg4[%c0_3, %c0_4] : memref<1x4096xf32, #tpu.memory_space<vmem>>, vector<1x4096xf32>
    tpu.vector_store %arg4[%c0_3, %c0_4], %6 {strides = array<i32>} : memref<1x4096xf32, #tpu.memory_space<vmem>>, vector<1x4096xf32>,
    return
  }
  func.func @transform_0(%arg0: i32, %arg1: memref<1xf32, #tpu.memory_space<smem>>, %arg2: memref<1xf32, #tpu.memory_space<smem>>) -> (i32, i32) {
    %c0_i32 = arith.constant 0 : i32
    %c0_i32_0 = arith.constant 0 : i32
    return %arg0, %c0_i32 : i32, i32
  }
  func.func @transform_1(%arg0: i32, %arg1: memref<1xf32, #tpu.memory_space<smem>>, %arg2: memref<1xf32, #tpu.memory_space<smem>>) -> (i32, i32) {
    %c0_i32 = arith.constant 0 : i32
    %c0_i32_0 = arith.constant 0 : i32
    return %arg0, %c0_i32 : i32, i32
  }
}

</mosaic_0001>

<bundles_post_ra>
// kernel: tpu_custom_call.1
= control target key start
LH: loop header
LB: loop body
LE: loop exit
PB: predicated region body
PF: predicated region fallthrough
CT: control target
= control target key end

     0   :  { %10 = vsyncpa [#allocation6], 0  ;;  %s152_s0 = inlined_call_operand.<no memory space> [shape: f32[1], index: 0, kind: input, shape index: {}]   ;;  %s153_s1 = inlined_call_operand.<no memory space> [shape: f32[1], index: 1, kind: input, shape index: {}]   ;;  %s154_s2 = inlined_call_operand.hbm [shape: f32[1,4096], index: 2, kind: input, shape index: {}]   ;;  %s155_s3 = inlined_call_operand.hbm [shape: f32[1,4096], index: 3, kind: output, shape index: {}]  }
   0x1   :  { %11 = vsyncpa [#allocation7], 0  ;;  %s17_s14 = sshll.u32 %s154_s2, 4  ;;  %s118_s15 = smov [#allocation5]   ;;  %s18_s14 = int_to_ptr.hbm [resolvable:$true] %s17_s14 }
   0x2   :  { %s19_s16 = sshll.u32 %s118_s15, 4  ;;  %s20_s16 = int_to_ptr.vmem [resolvable:$true] %s19_s16 }
   0x3   :  { %22 = dma.hbm_to_vmem [thread:$0]  %s18_s14, 512, %s20_s16, [#allocation6]  }
   0x4   :  { %114 = dma.done.wait [#allocation6], 512  }
   0x5   :  { %115 = vsyncadd [#allocation6], 4294966784  ;;  %v33_v0 = vstv %s152_s0  ;;  %v29_v1 = vld [vmem:[#allocation5] sm:$0xff]  ;;  %v38_v2 = vstv %s153_s1  ;;  %v30_v3 = vld [vmem:[#allocation5 + $0x8] sm:$0xff]  ;;  %s119_s2 = smov [#allocation8]   ;;  %s54_s0 = sshll.u32 %s155_s3, 4  ;;  %s55_s0 = int_to_ptr.hbm [resolvable:$true] %s54_s0 }
   0x6   :  { %v31_v4 = vld [vmem:[#allocation5 + $0x10] sm:$0xff]  ;;  %v34_v5 = vmul.f32 %v33_v0, %v29_v1  ;;  %v35_v6 = vmul.f32 %v33_v0, %v30_v3  ;;  %v32_v8 = vld [vmem:[#allocation5 + $0x18] sm:$0xff]  ;;  %s52_s21 = sshll.u32 %s119_s2, 4  ;;  %s53_s21 = int_to_ptr.vmem [resolvable:$true] %s52_s21 }
   0x7   :  { %v36_v7 = vmul.f32 %v33_v0, %v31_v4  ;;  %v37_v9 = vmul.f32 %v33_v0, %v32_v8 }
   0x8   :  { %v39_v10 = vadd.f32 %v38_v2, %v34_v5  ;;  %v40_v11 = vadd.f32 %v38_v2, %v35_v6 }
   0x9   :  { %v41_v12 = vadd.f32 %v38_v2, %v36_v7  ;;  %v42_v13 = vadd.f32 %v38_v2, %v37_v9 }
   0xa   :  { %43 = vst [vmem:[#allocation8] sm:$0xff] %v39_v10 }
   0xb   :  { %44 = vst [vmem:[#allocation8 + $0x8] sm:$0xff] %v40_v11 }
   0xc   :  { %45 = vst [vmem:[#allocation8 + $0x10] sm:$0xff] %v41_v12 }
   0xd   :  { %46 = vst [vmem:[#allocation8 + $0x18] sm:$0xff] %v42_v13 }
   0xe   :  { %57 = dma.vmem_to_hbm [thread:$0]  %s53_s21, 512, %s55_s0, [#allocation7]  }
   0xf   :  { %116 = dma.done.wait [#allocation7], 512  }
  0x10   :  { %117 = vsyncadd [#allocation7], 4294966784 }
  0x11   :  { %62 = vsyncpa [#allocation6], 1 }
  0x12   :  { %63 = vsyncpa [#allocation7], 1 }

</bundles_post_ra>
